<compile_context>
chip_gen: v6e
topology: v6e:2x2x1
jax: 0.10.0
libtpu: 0.0.40
codegen_flags: <defaults>
</compile_context>

<pallas_src>
import jax
import jax.numpy as jnp
import numpy as np
from jax import lax
from jax.experimental import pallas as pl
from jax.experimental.pallas import tpu as pltpu


# lowbias32 mixing constants (second one stored as its int32 two's complement so
# the whole hash runs on the best-supported int32 path; products wrap mod 2^32).
_MIX1 = np.int32(0x7FEB352D)
_MIX2 = np.int32(0x846CA68B - (1 << 32))


def _hash_uniform_01(idx, seed):
    """Counter hash -> uniform float32 in (0, 1].  idx, seed are int32."""
    x = idx + seed                                        # wraps, fine
    x = x ^ lax.shift_right_logical(x, np.int32(16))
    x = x * _MIX1
    x = x ^ lax.shift_right_logical(x, np.int32(15))
    x = x * _MIX2
    x = x ^ lax.shift_right_logical(x, np.int32(16))
    bits24 = lax.shift_right_logical(x, np.int32(8))      # in [0, 2^24)
    return (bits24.astype(jnp.float32) + 1.0) * jnp.float32(2.0 ** -24)


# ---------------------------------------------------------------------------
# Pallas kernel: one (head-block, query-row-tile) block per grid step.
# ---------------------------------------------------------------------------
def _quartic_mask_kernel(seed_ref,   # SMEM (1,)   int32   hash seed
                         b_ref,      # SMEM (1,)   float32 sigma_layer bias
                         q_ref,      # VMEM (hblk, rt, HD)
                         d_ref,      # VMEM (rt, N)
                         w_ref,      # VMEM (1, HD)        sigma_layer weight
                         mask_ref,   # VMEM (hblk, rt, N)  int8 out
                         sig_ref):   # VMEM (hblk, rt, 1)  float32 out
    hblk, row_tile, _ = q_ref.shape
    n_tok = d_ref.shape[1]

    q = q_ref[...].astype(jnp.float32)                    # (hblk, rt, HD)
    w = w_ref[...].astype(jnp.float32)                    # (1, HD)

    # sigma = Linear(HD -> 1)(q): VPU multiply + lane reduce.  The (rt,16)x(16,1)
    # matvec is far too small to be worth an MXU push/pop.
    sig = jnp.sum(q * w, axis=-1, keepdims=True) + b_ref[0]   # (hblk, rt, 1)
    sig_ref[...] = sig

    # d = dists / sigma^2 : one divide per (head, row) instead of per element.
    inv_sig2 = 1.0 / (sig * sig)                           # (hblk, rt, 1)
    d = d_ref[...][None, :, :] * inv_sig2                  # (hblk, rt, N)

    # Support clip: d >= 0 always (dists >= 0, sigma^2 >= 0), so max(1-d, 0)
    # replaces the reference's abs + cmp + select (3 VALU ops -> 2 on the hot
    # tensor); d = +inf / NaN rows end up all-False exactly like the reference.
    t = jnp.maximum(1.0 - d, 0.0)
    s = t * t                                              # ∝ quartic kernel (15/16 cancels)
    s_max = jnp.max(s, axis=-1, keepdims=True)             # (hblk, rt, 1)  XLU

    # ---- in-kernel uniform noise: hash of the element's global index ------
    i = pl.program_id(0)                                   # head-block index
    j = pl.program_id(1)                                   # row-block index
    h = lax.broadcasted_iota(jnp.int32, (hblk, row_tile), 0)
    r = lax.broadcasted_iota(jnp.int32, (hblk, row_tile), 1)
    row_ctr = ((i * hblk + h) * n_tok + (j * row_tile + r)) * n_tok  # (hblk, rt)
    col = lax.broadcasted_iota(jnp.int32, (hblk, row_tile, n_tok), 2)
    v = _hash_uniform_01(row_ctr[:, :, None] + col, seed_ref[0])     # (hblk, rt, N)

    # RelaxedBernoulli(T, probs).sample() > 0.5  ==  probs + u > 1
    #                                            ==  s >= v * amax_row(s).
    # int8 out: 1 byte/element writeback (the only large HBM stream left).
    mask_ref[...] = (s >= v * s_max).astype(jnp.int8)


# ---------------------------------------------------------------------------
# Tiling heuristic (generation-aware): keep >= 4 grid steps for megacore /
# pipelining, keep per-step f32 temporaries ~1 MiB so the footprint (several
# live temps + double-buffered in/out blocks) fits v5e's 16 MiB scoped VMEM and
# v7x's 64 MiB physical / 32 MiB scoped budget without touching vmem_limit_bytes.
# ---------------------------------------------------------------------------
def _choose_tiling(bh, n_tokens, *, temp_budget_bytes=1 << 20,
                   min_grid_steps=4, max_hblk=8):
    hblk = 1
    for cand in range(1, min(bh, max_hblk) + 1):
        if bh % cand == 0 and bh // cand >= min_grid_steps:
            hblk = cand
    rows_per_temp = max(temp_budget_bytes // (4 * hblk * n_tokens), 8)
    if n_tokens <= rows_per_temp:
        row_tile = n_tokens            # full token axis (e.g. N=17 test config)
    else:
        row_tile = (rows_per_temp // 8) * 8   # multiple of 8 (sublane rule)
    return hblk, row_tile


# ---------------------------------------------------------------------------
# Wrapper (glue): tiling, seed derivation, pallas_call.
# ---------------------------------------------------------------------------
def quartic_kernel_forward(query, dists, w_sigma, b_sigma, temperature, rng_key):
    """query: (B, H, N, HD); w_sigma: (1, HD) torch-Linear layout; b_sigma: (1,).

    Returns (mask bool (B, H, N, N), sigmas float32 (B, H, N, 1)).
    `temperature` cancels exactly out of `sample > 0.5` (see header note).
    """
    del temperature
    B, H, N, HD = query.shape
    assert dists.shape == (N, N)
    bh = B * H
    hblk, row_tile = _choose_tiling(bh, N)
    n_row_blocks = pl.cdiv(N, row_tile)

    q = query.reshape(bh, N, HD).astype(jnp.float32)
    w = jnp.asarray(w_sigma, jnp.float32).reshape(1, HD)
    b = jnp.asarray(b_sigma, jnp.float32).reshape(1)
    d = jnp.asarray(dists, jnp.float32)
    seed = jax.random.randint(rng_key, (1,), 0, 2**31 - 1, dtype=jnp.int32)

    mask_i8, sig = pl.pallas_call(
        _quartic_mask_kernel,
        out_shape=(
            jax.ShapeDtypeStruct((bh, N, N), jnp.int8),     # mask
            jax.ShapeDtypeStruct((bh, N, 1), jnp.float32),  # sigmas
        ),
        grid=(bh // hblk, n_row_blocks),
        in_specs=[
            pl.BlockSpec(memory_space=pltpu.MemorySpace.SMEM),   # seed scalar
            pl.BlockSpec(memory_space=pltpu.MemorySpace.SMEM),   # bias scalar
            pl.BlockSpec((hblk, row_tile, HD), lambda i, j: (i, j, 0)),
            pl.BlockSpec((row_tile, N),        lambda i, j: (j, 0)),
            pl.BlockSpec((1, HD),              lambda i, j: (0, 0)),
        ],
        out_specs=(
            pl.BlockSpec((hblk, row_tile, N), lambda i, j: (i, j, 0)),
            pl.BlockSpec((hblk, row_tile, 1), lambda i, j: (i, j, 0)),
        ),
        # Every block is independent -> shard both axes across TensorCores.
        compiler_params=pltpu.CompilerParams(
            dimension_semantics=("parallel", "parallel")),
    )(seed, b, q, d, w)

    # NOTE: trailing N=17 is not lane-dense; padding it to 128 would inflate the
    # int8 writeback ~7.5x and need an extra slicing pass, so it is not done.
    mask = mask_i8.astype(jnp.bool_).reshape(B, H, N, N)
    sigmas = sig.reshape(B, H, N, 1)
    return mask, sigmas


# ---------------------------------------------------------------------------
# Pairwise patch distances (precomputed constant, plain numpy glue).
# ---------------------------------------------------------------------------
def get_pairwise_distances(n_patches):
    n_rows = n_cols = int(np.sqrt(n_patches))
    rows, cols = np.indices((n_rows, n_cols))
    token_idxs = np.stack([rows.flatten(), cols.flatten()], axis=-1).astype(np.float32)
    diff = token_idxs[:, None, :] - token_idxs[None, :, :]      # (P, P, 2)
    d = np.linalg.norm(diff, ord=2, axis=-1)                    # L2 norm (norm=2)
    d = np.pad(d, ((1, 0), (1, 0)), mode="constant")            # CLS row/col zeros
    return jnp.asarray(d, dtype=jnp.float32)                    # (P+1, P+1)


if __name__ == "__main__":
    # Config: img 16x16, patch 4x4 -> 16 patches -> N = 17 tokens (incl. CLS)
    B, H, HD = 2, 4, 16
    img, patch = 16, 4
    n_patches = (img // patch) * (img // patch)
    N = n_patches + 1
    temperature = 0.1

    key = jax.random.PRNGKey(0)
    kq, kw, kb, ku = jax.random.split(key, 4)

    query = jax.random.normal(kq, (B, H, N, HD), dtype=jnp.float32)
    # sigma_layer = Linear(head_dim, 1): torch weight (1, HD), bias (1,)
    w_sigma = jax.random.normal(kw, (1, HD), dtype=jnp.float32) * (1.0 / np.sqrt(HD))
    b_sigma = jax.random.normal(kb, (1,), dtype=jnp.float32) * 0.1

    dists = get_pairwise_distances(n_patches)

    mask, sigmas = quartic_kernel_forward(query, dists, w_sigma, b_sigma,
                                          temperature, rng_key=ku)
    jax.block_until_ready((mask, sigmas))

    # Shape / dtype checks.
    assert mask.shape == (B, H, N, N) and mask.dtype == jnp.bool_
    assert sigmas.shape == (B, H, N, 1) and sigmas.dtype == jnp.float32

    # Deterministic sigma path must match a pure-JAX reference exactly-ish.
    ref_sig = jnp.einsum("bhnd,od->bhno", query, w_sigma) + b_sigma
    assert bool(jnp.allclose(sigmas, ref_sig, rtol=1e-5, atol=1e-5))
    assert bool(jnp.all(jnp.isfinite(sigmas)))

    # Pure-JAX reference probability field (mirrors the PyTorch forward).
    ref_d = dists[None, None, :, :] / (ref_sig ** 2)
    ref_d = jnp.where(jnp.abs(ref_d) <= 1.0, ref_d, jnp.float32(1.0))
    ref_k = jnp.float32(15.0 / 16.0) * (1.0 - ref_d) ** 2
    ref_p = ref_k / jnp.max(ref_k, axis=-1, keepdims=True)
    ref_p = jnp.nan_to_num(ref_p, nan=0.0)
    # probs == 1 (CLS row, CLS column, diagonal) must always sample True,
    # probs == 0 (outside the kernel support) must always sample False,
    # and the mean mask rate must track the mean probability.
    assert bool(jnp.all(jnp.where(ref_p == 1.0, mask, True)))
    assert bool(jnp.all(jnp.where(ref_p == 0.0, ~mask, True)))
    assert abs(float(mask.astype(jnp.float32).mean()) - float(ref_p.mean())) < 0.1

    print("KERNEL_OK")
</pallas_src>

<mosaic_0001>
module attributes {stable_mosaic.version = 11 : i64} {
  func.func @_quartic_mask_kernel(%arg0: i32, %arg1: i32, %arg2: memref<1xi32, #tpu.memory_space<smem>>, %arg3: memref<1xf32, #tpu.memory_space<smem>>, %arg4: memref<2x17x16xf32, #tpu.memory_space<vmem>>, %arg5: memref<17x17xf32, #tpu.memory_space<vmem>>, %arg6: memref<1x16xf32, #tpu.memory_space<vmem>>, %arg7: memref<2x17x17xi8, #tpu.memory_space<vmem>>, %arg8: memref<2x17x1xf32, #tpu.memory_space<vmem>>) attributes {dimension_semantics = [#tpu.dimension_semantics<parallel>, #tpu.dimension_semantics<parallel>], iteration_bounds = array<i64: 4, 1>, scalar_prefetch = 0 : i64, scratch_operands = 0 : i64, tpu.core_type = #tpu.core_type<tc>, window_params = [{transform_indices = @transform_0, window_bounds = array<i64: 1>}, {transform_indices = @transform_1, window_bounds = array<i64: 1>}, {transform_indices = @transform_2, window_bounds = array<i64: 2, 17, 16>}, {transform_indices = @transform_3, window_bounds = array<i64: 17, 17>}, {pipeline_mode = #tpu.pipeline_mode<synchronous>, transform_indices = @transform_4, window_bounds = array<i64: 1, 16>}, {transform_indices = @transform_5, window_bounds = array<i64: 2, 17, 17>}, {transform_indices = @transform_6, window_bounds = array<i64: 2, 17, 1>}]} {
    %c0 = arith.constant 0 : index
    %c0_0 = arith.constant 0 : index
    %c0_1 = arith.constant 0 : index
    %0 = vector.load %arg4[%c0, %c0_0, %c0_1] : memref<2x17x16xf32, #tpu.memory_space<vmem>>, vector<2x17x16xf32>
    %c0_2 = arith.constant 0 : index
    %c0_3 = arith.constant 0 : index
    %1 = vector.load %arg6[%c0_2, %c0_3] : memref<1x16xf32, #tpu.memory_space<vmem>>, vector<1x16xf32>
    %2 = vector.shape_cast %1 : vector<1x16xf32> to vector<1x1x16xf32>
    %3 = vector.broadcast %2 : vector<1x1x16xf32> to vector<2x17x16xf32>
    %4 = arith.mulf %0, %3 : vector<2x17x16xf32>
    %cst = arith.constant dense<0.000000e+00> : vector<2x17xf32>
    %5 = vector.multi_reduction <add>, %4, %cst [2] : vector<2x17x16xf32> to vector<2x17xf32>
    %6 = vector.shape_cast %5 : vector<2x17xf32> to vector<2x17x1xf32>
    %c0_4 = arith.constant 0 : index
    %7 = memref.load %arg3[%c0_4] : memref<1xf32, #tpu.memory_space<smem>>
    %8 = vector.broadcast %7 : f32 to vector<2x17x1xf32>
    %9 = arith.addf %6, %8 : vector<2x17x1xf32>
    %c0_5 = arith.constant 0 : index
    %c0_6 = arith.constant 0 : index
    %c0_7 = arith.constant 0 : index
    %10 = vector.load %arg8[%c0_5, %c0_6, %c0_7] : memref<2x17x1xf32, #tpu.memory_space<vmem>>, vector<2x17x1xf32>
    tpu.vector_store %arg8[%c0_5, %c0_6, %c0_7], %9 {strides = array<i32>} : memref<2x17x1xf32, #tpu.memory_space<vmem>>, vector<2x17x1xf32>,
    %11 = arith.mulf %9, %9 : vector<2x17x1xf32>
    %cst_8 = arith.constant 1.000000e+00 : f32
    %12 = vector.broadcast %cst_8 : f32 to vector<2x17x1xf32>
    %13 = arith.divf %12, %11 : vector<2x17x1xf32>
    %c0_9 = arith.constant 0 : index
    %c0_10 = arith.constant 0 : index
    %14 = vector.load %arg5[%c0_9, %c0_10] : memref<17x17xf32, #tpu.memory_space<vmem>>, vector<17x17xf32>
    %15 = vector.shape_cast %14 : vector<17x17xf32> to vector<1x17x17xf32>
    %16 = vector.broadcast %15 : vector<1x17x17xf32> to vector<2x17x17xf32>
    %17 = vector.broadcast %13 : vector<2x17x1xf32> to vector<2x17x17xf32>
    %18 = arith.mulf %16, %17 : vector<2x17x17xf32>
    %cst_11 = arith.constant 1.000000e+00 : f32
    %19 = vector.broadcast %cst_11 : f32 to vector<2x17x17xf32>
    %20 = arith.subf %19, %18 : vector<2x17x17xf32>
    %cst_12 = arith.constant 0.000000e+00 : f32
    %21 = vector.broadcast %cst_12 : f32 to vector<2x17x17xf32>
    %22 = arith.maximumf %20, %21 : vector<2x17x17xf32>
    %23 = arith.mulf %22, %22 : vector<2x17x17xf32>
    %cst_13 = arith.constant dense<0xFF800000> : vector<2x17xf32>
    %24 = vector.multi_reduction <maximumf>, %23, %cst_13 [2] : vector<2x17x17xf32> to vector<2x17xf32>
    %25 = vector.shape_cast %24 : vector<2x17xf32> to vector<2x17x1xf32>
    %26 = tpu.iota {dimensions = array<i32: 0>} : vector<2x17xi32>
    %27 = tpu.iota {dimensions = array<i32: 1>} : vector<2x17xi32>
    %c2_i32 = arith.constant 2 : i32
    %28 = arith.muli %arg0, %c2_i32 : i32
    %29 = vector.broadcast %28 : i32 to vector<2x17xi32>
    %30 = arith.addi %29, %26 : vector<2x17xi32>
    %c17_i32 = arith.constant 17 : i32
    %31 = vector.broadcast %c17_i32 : i32 to vector<2x17xi32>
    %32 = arith.muli %30, %31 : vector<2x17xi32>
    %c17_i32_14 = arith.constant 17 : i32
    %33 = arith.muli %arg1, %c17_i32_14 : i32
    %34 = vector.broadcast %33 : i32 to vector<2x17xi32>
    %35 = arith.addi %34, %27 : vector<2x17xi32>
    %36 = arith.addi %32, %35 : vector<2x17xi32>
    %c17_i32_15 = arith.constant 17 : i32
    %37 = vector.broadcast %c17_i32_15 : i32 to vector<2x17xi32>
    %38 = arith.muli %36, %37 : vector<2x17xi32>
    %39 = tpu.iota {dimensions = array<i32: 2>} : vector<2x17x17xi32>
    %40 = vector.shape_cast %38 : vector<2x17xi32> to vector<2x17x1xi32>
    %41 = vector.broadcast %40 : vector<2x17x1xi32> to vector<2x17x17xi32>
    %42 = arith.addi %41, %39 : vector<2x17x17xi32>
    %c0_16 = arith.constant 0 : index
    %43 = memref.load %arg2[%c0_16] : memref<1xi32, #tpu.memory_space<smem>>
    %44 = vector.broadcast %43 : i32 to vector<2x17x17xi32>
    %45 = arith.addi %42, %44 : vector<2x17x17xi32>
    %c16_i32 = arith.constant 16 : i32
    %46 = vector.broadcast %c16_i32 : i32 to vector<2x17x17xi32>
    %47 = arith.shrui %45, %46 : vector<2x17x17xi32>
    %48 = arith.xori %45, %47 : vector<2x17x17xi32>
    %c2146121005_i32 = arith.constant 2146121005 : i32
    %49 = vector.broadcast %c2146121005_i32 : i32 to vector<2x17x17xi32>
    %50 = arith.muli %48, %49 : vector<2x17x17xi32>
    %c15_i32 = arith.constant 15 : i32
    %51 = vector.broadcast %c15_i32 : i32 to vector<2x17x17xi32>
    %52 = arith.shrui %50, %51 : vector<2x17x17xi32>
    %53 = arith.xori %50, %52 : vector<2x17x17xi32>
    %c-2073254261_i32 = arith.constant -2073254261 : i32
    %54 = vector.broadcast %c-2073254261_i32 : i32 to vector<2x17x17xi32>
    %55 = arith.muli %53, %54 : vector<2x17x17xi32>
    %c16_i32_17 = arith.constant 16 : i32
    %56 = vector.broadcast %c16_i32_17 : i32 to vector<2x17x17xi32>
    %57 = arith.shrui %55, %56 : vector<2x17x17xi32>
    %58 = arith.xori %55, %57 : vector<2x17x17xi32>
    %c8_i32 = arith.constant 8 : i32
    %59 = vector.broadcast %c8_i32 : i32 to vector<2x17x17xi32>
    %60 = arith.shrui %58, %59 : vector<2x17x17xi32>
    %61 = arith.sitofp %60 : vector<2x17x17xi32> to vector<2x17x17xf32>
    %cst_18 = arith.constant 1.000000e+00 : f32
    %62 = vector.broadcast %cst_18 : f32 to vector<2x17x17xf32>
    %63 = arith.addf %61, %62 : vector<2x17x17xf32>
    %cst_19 = arith.constant 5.96046448E-8 : f32
    %64 = vector.broadcast %cst_19 : f32 to vector<2x17x17xf32>
    %65 = arith.mulf %63, %64 : vector<2x17x17xf32>
    %66 = vector.broadcast %25 : vector<2x17x1xf32> to vector<2x17x17xf32>
    %67 = arith.mulf %65, %66 : vector<2x17x17xf32>
    %68 = arith.cmpf oge, %23, %67 : vector<2x17x17xf32>
    %69 = arith.extui %68 : vector<2x17x17xi1> to vector<2x17x17xi8>
    %c0_20 = arith.constant 0 : index
    %c0_21 = arith.constant 0 : index
    %c0_22 = arith.constant 0 : index
    %70 = vector.load %arg7[%c0_20, %c0_21, %c0_22] : memref<2x17x17xi8, #tpu.memory_space<vmem>>, vector<2x17x17xi8>
    tpu.vector_store %arg7[%c0_20, %c0_21, %c0_22], %69 {strides = array<i32>} : memref<2x17x17xi8, #tpu.memory_space<vmem>>, vector<2x17x17xi8>,
    return
  }
  func.func @transform_0(%arg0: i32, %arg1: i32) -> i32 {
    %c0_i32 = arith.constant 0 : i32
    %c0_i32_0 = arith.constant 0 : i32
    return %c0_i32 : i32
  }
  func.func @transform_1(%arg0: i32, %arg1: i32) -> i32 {
    %c0_i32 = arith.constant 0 : i32
    %c0_i32_0 = arith.constant 0 : i32
    return %c0_i32 : i32
  }
  func.func @transform_2(%arg0: i32, %arg1: i32) -> (i32, i32, i32) {
    %c0_i32 = arith.constant 0 : i32
    %c0_i32_0 = arith.constant 0 : i32
    return %arg0, %arg1, %c0_i32 : i32, i32, i32
  }
  func.func @transform_3(%arg0: i32, %arg1: i32) -> (i32, i32) {
    %c0_i32 = arith.constant 0 : i32
    %c0_i32_0 = arith.constant 0 : i32
    return %arg1, %c0_i32 : i32, i32
  }
  func.func @transform_4(%arg0: i32, %arg1: i32) -> (i32, i32) {
    %c0_i32 = arith.constant 0 : i32
    %c0_i32_0 = arith.constant 0 : i32
    %c0_i32_1 = arith.constant 0 : i32
    return %c0_i32, %c0_i32_0 : i32, i32
  }
  func.func @transform_5(%arg0: i32, %arg1: i32) -> (i32, i32, i32) {
    %c0_i32 = arith.constant 0 : i32
    %c0_i32_0 = arith.constant 0 : i32
    return %arg0, %arg1, %c0_i32 : i32, i32, i32
  }
  func.func @transform_6(%arg0: i32, %arg1: i32) -> (i32, i32, i32) {
    %c0_i32 = arith.constant 0 : i32
    %c0_i32_0 = arith.constant 0 : i32
    return %arg0, %arg1, %c0_i32 : i32, i32, i32
  }
}

</mosaic_0001>

<bundles_post_ra>
// kernel: tpu_custom_call.1
= control target key start
LH: loop header
LB: loop body
LE: loop exit
PB: predicated region body
PF: predicated region fallthrough
CT: control target
= control target key end

     0   :  { %s932_s25 = smov 0   ;;  %s934_s26 = smov 0   ;;  %s1067_s0 = inlined_call_operand.<no memory space> [shape: s32[1], index: 0, kind: input, shape index: {}]   ;;  %s1068_s1 = inlined_call_operand.<no memory space> [shape: f32[1], index: 1, kind: input, shape index: {}]   ;;  %s1069_s2 = inlined_call_operand.vmem [shape: f32[8,17,16], index: 2, kind: input, shape index: {}]   ;;  %s1070_s3 = inlined_call_operand.vmem [shape: f32[17,17], index: 3, kind: input, shape index: {}]   ;;  %s1071_s4 = inlined_call_operand.vmem [shape: f32[1,16], index: 4, kind: input, shape index: {}]   ;;  %s1072_s5 = inlined_call_operand.vmem [shape: s8[8,17,17], index: 5, kind: output, shape index: {0}]   ;;  %s1073_s6 = inlined_call_operand.vmem [shape: f32[8,17,1], index: 6, kind: output, shape index: {1}]  }
   0x1   :  { %12 = sst [smem:[#allocation2]] %s1067_s0  ;;  %s936_s27 = smov 0  }
   0x2   :  { %13 = sst [smem:[#allocation3]] %s1068_s1 }
   0x3 LB: > { %s31_s0 = sadd.s32 1, %s884_s26  ;;  %p816_p0 = scmp.ge.s32.totalorder %s888_s27, 1  ;;  %s888_s27 = sphi %s936_s27, %s19_s27   ;;  %s884_s26 = sphi %s934_s26, %s1077_s26   ;;  %s880_s25 = sphi %s932_s25, %s1076_s25  }
   0x4   : > { %p33_p1 = scmp.ge.s32.totalorder %s31_s0, 4  ;;  %p253_p2 = scmp.lt.s32.totalorder %s888_s27, 5 }
   0x6   : > { %s1079_s0 = smov (%p33_p1, %s31_s0), 0  ;;  %p254_p3 = pnand %p816_p0, %p253_p2 }
   0x7   : > { %s950_s1 = sshll.u32 (!%p254_p3), %s880_s25, 1  ;;  %s391_s11 = sld [smem:[#allocation3]] (!%p254_p3) }
   0x8   : > { %257 = sbr.rel (%p254_p3) target bundleno = 352 (0x160), region = 40  ;;  %p310_p4 = scmp.lt.s32.totalorder (!%p254_p3), %s950_s1, 7 }
   0x9   : > { %s521_s21 = sld [smem:[#allocation2]] (!%p254_p3) }
   0xd   : > { %s954_s28 = scalar_select %p310_p4, %s950_s1, 7  ;;  %v823_v0 = vld [vmem:[%s1071_s4] ss:$0 sm:$0xff]  ;;  %vm378_vm0 = vcmask 122880   ;;  %vm371_vm1 = vcmask 130048   ;;  %v472_v4 = vlaneseq  ;;  %v477_v19 = vstv %s950_s1  ;;  %v426_v57 = vld [vmem:[%s1070_s3 + $0x8] sm:$0xff] }
   0xe   : > { %v392_v31 = vstv %s391_s11  ;;  %vm402_vm2 = vcmask 0   ;;  %vm399_vm3 = vcmask 7168   ;;  %v427_v50 = vld [vmem:[%s1070_s3 + $0x10] sm:$0x1]  ;;  %v425_v51 = vld [vmem:[%s1070_s3] sm:$0xff]  ;;  %vm452_vm4 = vcmask 138240  }
   0xf   : > { %s827_s29 = smul.u32 24, %s954_s28  ;;  %v473_v14 = vshrl.u32 %v472_v4, 7  ;;  %v972_v23 = vand.u32 127, %v472_v4  ;;  %vm459_vm5 = vcmask 131072   ;;  %vm643_vm12 = vsmask.f32 0 }
  0x10   : > { %s828_s22 = smul.u32 6, %s954_s28  ;;  %vm1036_vm14 = vmand %vm459_vm5, %vm643_vm12  ;;  %vm639_vm15 = vcmask 132096  }
  0x11   : > { %s317_s10 = scalar_lea.vmem %s1069_s2, %s827_s29  ;;  %v478_v22 = vadd.s32 %v477_v19, %v473_v14  ;;  %v487_v27 = vsub.s32 0, %v473_v14  ;;  %v502_v29 = vsub.s32 1, %v473_v14  ;;  %s347_s14 = scalar_lea.vmem %s1073_s6, %s827_s29 }
  0x12   : > { %v354_v1 = vld [vmem:[%s317_s10 + $0x10] sm:$0x1]  ;;  %v352_v2 = vld [vmem:[%s317_s10] sm:$0xff]  ;;  %v355_v3 = vld [vmem:[%s317_s10 + $0x18] sm:$0xff]  ;;  %s1032_s25 = scalar_lea.vmem %s1072_s5, %s828_s22 }
  0x13   : > { %v367_v5 = vmul.f32 %v823_v0, %v354_v1  ;;  %v365_v6 = vmul.f32 %v823_v0, %v352_v2  ;;  %v368_v7 = vmul.f32 %v823_v0, %v355_v3  ;;  %v353_v8 = vld [vmem:[%s317_s10 + $0x8] sm:$0xff]  ;;  %v356_v11 = vld [vmem:[%s317_s10 + $0x20] sm:$0xff]  ;;  %v479_v24 = vmul.u32 17, %v478_v22 }
  0x14   : > { %v366_v9 = vmul.f32 %v823_v0, %v353_v8  ;;  %v357_v10 = vld [vmem:[%s317_s10 + $0x28] sm:$0x1]  ;;  %v369_v18 = vmul.f32 %v823_v0, %v356_v11 }
  0x15   : > { %v379_v12 = vsel %vm378_vm0, %v367_v5, 0.0  ;;  %v372_v13 = vsel %vm371_vm1, %v365_v6, 0.0  ;;  %v382_v15 = vsel %vm371_vm1, %v368_v7, 0.0  ;;  %v370_v17 = vmul.f32 %v823_v0, %v357_v10 }
  0x16   : > { %380 = vadd.xlane.f32.xlu1 %v379_v12  ;;  %373 = vadd.xlane.f32.xlu0 %v372_v13  ;;  %v375_v16 = vsel %vm371_vm1, %v366_v9, 0.0  ;;  %v385_v21 = vsel %vm371_vm1, %v369_v18, 0.0  ;;  %v483_v25 = vadd.s32 %v479_v24, %v972_v23 }
  0x17   : > { %v388_v20 = vsel %vm378_vm0, %v370_v17, 0.0 }
  0x18   : > { %v484_v26 = vmul.u32 17, %v483_v25 }
  0x1a   : > { %383 = vadd.xlane.f32.xlu1 %v382_v15  ;;  %376 = vadd.xlane.f32.xlu0 %v375_v16  ;;  %v488_v28 = vrot.slane %v484_v26, %v487_v27  ;;  %v503_v30 = vrot.slane %v484_v26, %v502_v29 }
  0x1e   : > { %389 = vadd.xlane.f32.xlu1 %v388_v20  ;;  %386 = vadd.xlane.f32.xlu0 %v385_v21 }
  0x2f   : > { %494 = vbcast.lane.b32.xlu1 %v488_v28, 264 }
  0x33   : > { %498 = vbcast.lane.b32.xlu1 %v488_v28, 272 }
  0x34   : > { %490 = vbcast.lane.b32.xlu0 %v488_v28, 256 }
  0x37   : > { %505 = vbcast.lane.b32.xlu1 %v503_v30, 256 }
  0x38   : > { %509 = vbcast.lane.b32.xlu0 %v503_v30, 264 }
  0x3b   : > { %513 = vbcast.lane.b32.xlu1 %v503_v30, 272 }
  0x9f   : > { %v381_v32 = vpop.xlane.xlu1 %380  ;;  %v374_v33 = vpop.xlane.xlu0 %373 }
  0xa0   : > { %v395_v34 = vadd.f32 %v392_v31, %v381_v32  ;;  %v393_v35 = vadd.f32 %v392_v31, %v374_v33  ;;  %v522_v33 = vstv %s521_s21 }
  0xa2   : > { %403 = vst.msk [vmem:[%s347_s14 + $0x10] sm:$0x1] %vm402_vm2, %v395_v34  ;;  %v409_v36 = vmul.f32 %v395_v34, %v395_v34  ;;  %v407_v37 = vmul.f32 %v393_v35, %v393_v35 }
  0xa3   : > { %400 = vst.msk [vmem:[%s347_s14] sm:$0xff] %vm399_vm3, %v393_v35  ;;  %v384_v38 = vpop.xlane.xlu1 %383  ;;  %v377_v39 = vpop.xlane.xlu0 %376 }
  0xa4   : > { %854 = vrcp.f32 %v409_v36  ;;  %v396_v40 = vadd.f32 %v392_v31, %v384_v38  ;;  %v394_v41 = vadd.f32 %v392_v31, %v377_v39 }
  0xa5   : > { %856 = vrcp.f32 %v407_v37 }
  0xa6   : > { %404 = vst.msk [vmem:[%s347_s14 + $0x18] sm:$0xff] %vm399_vm3, %v396_v40  ;;  %v410_v42 = vmul.f32 %v396_v40, %v396_v40  ;;  %401 = vst.msk [vmem:[%s347_s14 + $0x8] sm:$0xff] %vm399_vm3, %v394_v41  ;;  %v408_v43 = vmul.f32 %v394_v41, %v394_v41 }
  0xa7   : > { %v390_v44 = vpop.xlane.xlu1 %389  ;;  %v387_v45 = vpop.xlane.xlu0 %386 }
  0xa8   : > { %858 = vrcp.f32 %v410_v42  ;;  %v398_v46 = vadd.f32 %v392_v31, %v390_v44  ;;  %v397_v47 = vadd.f32 %v392_v31, %v387_v45 }
  0xa9   : > { %860 = vrcp.f32 %v408_v43 }
  0xaa   : > { %406 = vst.msk [vmem:[%s347_s14 + $0x28] sm:$0x1] %vm402_vm2, %v398_v46  ;;  %v412_v48 = vmul.f32 %v398_v46, %v398_v46  ;;  %v411_v49 = vmul.f32 %v397_v47, %v397_v47 }
  0xab   : > { %405 = vst.msk [vmem:[%s347_s14 + $0x20] sm:$0xff] %vm399_vm3, %v397_v47  ;;  %v495_v26 = vpop.permute.xlu1 %494  ;;  %v491_v29 = vpop.permute.xlu0 %490 }
  0xac   : > { %862 = vrcp.f32 %v412_v48  ;;  %v515_v30 = vadd.s32 %v491_v29, %v972_v23  ;;  %v516_v31 = vadd.s32 %v495_v26, %v972_v23 }
  0xad   : > { %864 = vrcp.f32 %v411_v49 }
  0xae   : > { %v523_v35 = vadd.s32 %v522_v33, %v515_v30  ;;  %v524_v36 = vadd.s32 %v522_v33, %v516_v31 }
  0xaf   : > { %v499_v27 = vpop.permute.xlu1 %498  ;;  %v510_v39 = vpop.permute.xlu0 %509 }
  0xb0   : > { %v517_v32 = vadd.s32 %v499_v27, %v972_v23  ;;  %v529_v41 = vshrl.u32 %v523_v35, 16  ;;  %v519_v42 = vadd.s32 %v510_v39, %v972_v23  ;;  %v530_v43 = vshrl.u32 %v524_v36, 16 }
  0xb1   : > { %v855_v52 = vpop.eup %854 }
  0xb2   : > { %v857_v53 = vpop.eup %856  ;;  %v430_v54 = vmul.f32 %v855_v52, %v427_v50  ;;  %v525_v37 = vadd.s32 %v522_v33, %v517_v32  ;;  %v535_v47 = vxor.u32 %v529_v41, %v523_v35  ;;  %v527_v48 = vadd.s32 %v522_v33, %v519_v42 }
  0xb3   : > { %v428_v55 = vmul.f32 %v857_v53, %v425_v51  ;;  %v506_v28 = vpop.permute.xlu1 %505  ;;  %v536_v49 = vxor.u32 %v530_v43, %v524_v36 }
  0xb4   : > { %v436_v56 = vsub.f32 1.0, %v430_v54  ;;  %v518_v40 = vadd.s32 %v506_v28, %v972_v23  ;;  %v531_v44 = vshrl.u32 %v525_v37, 16  ;;  %v541_v53 = vmul.u32 2146121005, %v535_v47 }
  0xb5   : > { %v859_v58 = vpop.eup %858  ;;  %v434_v59 = vsub.f32 1.0, %v428_v55  ;;  %v533_v54 = vshrl.u32 %v527_v48, 16  ;;  %v542_v55 = vmul.u32 2146121005, %v536_v49 }
  0xb6   : > { %v861_v60 = vpop.eup %860  ;;  %v442_v61 = vmax.f32 %v436_v56, 0.0  ;;  %v431_v62 = vmul.f32 %v859_v58, %v425_v51  ;;  %v526_v46 = vadd.s32 %v522_v33, %v518_v40 }
  0xb7   : > { %v440_v63 = vmax.f32 %v434_v59, 0.0  ;;  %v429_v0 = vmul.f32 %v861_v60, %v426_v57  ;;  %v514_v34 = vpop.permute.xlu1 %513  ;;  %v547_v59 = vshrl.u32 %v541_v53, 15  ;;  %v539_v60 = vxor.u32 %v533_v54, %v527_v48 }
  0xb8   : > { %v437_v1 = vsub.f32 1.0, %v431_v62  ;;  %v997_v4 = vmul.f32 %v442_v61, %v442_v61  ;;  %v520_v38 = vadd.s32 %v514_v34, %v972_v23  ;;  %v532_v52 = vshrl.u32 %v526_v46, 16 }
  0xb9   : > { %v863_v2 = vpop.eup %862  ;;  %v995_v3 = vmul.f32 %v440_v63, %v440_v63  ;;  %v435_v5 = vsub.f32 1.0, %v429_v0  ;;  %v548_v61 = vshrl.u32 %v542_v55, 15  ;;  %v553_v0 = vxor.u32 %v547_v59, %v541_v53 }
  0xba   : > { %v865_v6 = vpop.eup %864  ;;  %v443_v7 = vmax.f32 %v437_v1, 0.0  ;;  %v433_v8 = vmul.f32 %v863_v2, %v427_v50  ;;  %v460_v13 = vsel %vm459_vm5, %v997_v4, -inf  ;;  %v528_v45 = vadd.s32 %v522_v33, %v520_v38 }
  0xbb   : > { %v453_v9 = vsel %vm452_vm4, %v995_v3, -inf  ;;  %v441_v10 = vmax.f32 %v435_v5, 0.0  ;;  %v432_v11 = vmul.f32 %v865_v6, %v426_v57  ;;  %v537_v50 = vxor.u32 %v531_v44, %v525_v37 }
  0xbc   : > { %454 = vmax.xlane.f32.xlu0 %v453_v9  ;;  %v439_v12 = vsub.f32 1.0, %v433_v8  ;;  %v1005_v15 = vmul.f32 %v443_v7, %v443_v7  ;;  %v534_v51 = vshrl.u32 %v528_v45, 16  ;;  %v538_v58 = vxor.u32 %v532_v52, %v526_v46 }
  0xbd   : > { %v1003_v14 = vmul.f32 %v441_v10, %v441_v10  ;;  %v438_v16 = vsub.f32 1.0, %v432_v11  ;;  %v543_v56 = vmul.u32 2146121005, %v537_v50  ;;  %v545_v1 = vmul.u32 2146121005, %v539_v60 }
  0xbe   : > { %v445_v17 = vmax.f32 %v439_v12, 0.0  ;;  %v463_v21 = vsel %vm452_vm4, %v1005_v15, -inf  ;;  %v540_v57 = vxor.u32 %v534_v51, %v528_v45  ;;  %v544_v63 = vmul.u32 2146121005, %v538_v58 }
  0xbf   : > { %v456_v18 = vsel %vm452_vm4, %v1003_v14, -inf  ;;  %v444_v19 = vmax.f32 %v438_v16, 0.0  ;;  %v549_v23 = vshrl.u32 %v543_v56, 15  ;;  %v554_v5 = vxor.u32 %v548_v61, %v542_v55 }
  0xc0   : > { %461 = vmax.xlane.f32.xlu0 %v460_v13  ;;  %457 = vmax.xlane.f32.xlu1 %v456_v18  ;;  %v1009_v20 = vmul.f32 %v445_v17, %v445_v17  ;;  %v546_v62 = vmul.u32 2146121005, %v540_v57  ;;  %v550_v7 = vshrl.u32 %v544_v63, 15  ;;  %v559_v8 = vmul.u32 2221713035, %v553_v0 }
  0xc1   : > { %v1013_v22 = vmul.f32 %v444_v19, %v444_v19  ;;  %v555_v6 = vxor.u32 %v549_v23, %v543_v56  ;;  %v551_v9 = vshrl.u32 %v545_v1, 15  ;;  %v560_v10 = vmul.u32 2221713035, %v554_v5 }
  0xc2   : > { %v469_v24 = vsel %vm459_vm5, %v1009_v20, -inf  ;;  %v552_v2 = vshrl.u32 %v546_v62, 15  ;;  %v565_v13 = vshrl.u32 %v559_v8, 16  ;;  %v556_v16 = vxor.u32 %v550_v7, %v544_v63 }
  0xc3   : > { %v466_v25 = vsel %vm452_vm4, %v1013_v22, -inf  ;;  %v561_v11 = vmul.u32 2221713035, %v555_v6  ;;  %v557_v17 = vxor.u32 %v551_v9, %v545_v1  ;;  %v566_v18 = vshrl.u32 %v560_v10, 16 }
  0xc4   : > { %464 = vmax.xlane.f32.xlu0 %v463_v21  ;;  %470 = vmax.xlane.f32.xlu1 %v469_v24  ;;  %v558_v12 = vxor.u32 %v552_v2, %v546_v62  ;;  %v571_v24 = vxor.u32 %v565_v13, %v559_v8  ;;  %v890_v2 = vmov 0  }
  0xc5   : > { %v567_v19 = vshrl.u32 %v561_v11, 16  ;;  %v563_v26 = vmul.u32 2221713035, %v557_v17  ;;  %v572_v27 = vxor.u32 %v566_v18, %v560_v10 }
  0xc6   : > { %v564_v21 = vmul.u32 2221713035, %v558_v12  ;;  %v577_v30 = vshrl.u32 %v571_v24, 8 }
  0xc7   : > { %v573_v28 = vxor.u32 %v567_v19, %v561_v11  ;;  %v569_v32 = vshrl.u32 %v563_v26, 16  ;;  %v578_v33 = vshrl.u32 %v572_v27, 8 }
  0xc8   : > { %467 = vmax.xlane.f32.xlu0 %v466_v25  ;;  %v562_v25 = vmul.u32 2221713035, %v556_v16  ;;  %v570_v29 = vshrl.u32 %v564_v21, 16  ;;  %v583_v36 = vcvt.s32.f32 %v577_v30  ;;  %v645_v16 = vld [vmem:[%s1032_s25 + $0x4] sm:$0x1] }
  0xc9   : > { %v579_v34 = vshrl.u32 %v573_v28, 8  ;;  %v575_v38 = vxor.u32 %v569_v32, %v563_v26  ;;  %v584_v39 = vcvt.s32.f32 %v578_v33 }
  0xca   : > { %v568_v31 = vshrl.u32 %v562_v25, 16  ;;  %v576_v35 = vxor.u32 %v570_v29, %v564_v21  ;;  %v589_v42 = vadd.f32 1.0, %v583_v36 }
  0xcb   : > { %v585_v40 = vcvt.s32.f32 %v579_v34  ;;  %v581_v44 = vshrl.u32 %v575_v38, 8  ;;  %v590_v45 = vadd.f32 1.0, %v584_v39 }
  0xcc   : > { %v574_v37 = vxor.u32 %v568_v31, %v562_v25  ;;  %v582_v41 = vshrl.u32 %v576_v35, 8  ;;  %v595_v49 = vmul.f32 5.9604645e-08, %v589_v42  ;;  %v650_v31 = vld [vmem:[%s1032_s25 + $0xa] sm:$0x1] }
  0xcd   : > { %v591_v46 = vadd.f32 1.0, %v585_v40  ;;  %v587_v51 = vcvt.s32.f32 %v581_v44  ;;  %v596_v53 = vmul.f32 5.9604645e-08, %v590_v45 }
  0xce   : > { %v580_v43 = vshrl.u32 %v574_v37, 8  ;;  %v588_v47 = vcvt.s32.f32 %v582_v41 }
  0xcf   : > { %v597_v54 = vmul.f32 5.9604645e-08, %v591_v46  ;;  %v593_v61 = vadd.f32 1.0, %v587_v51 }
  0xd0   : > { %v586_v50 = vcvt.s32.f32 %v580_v43  ;;  %v594_v55 = vadd.f32 1.0, %v588_v47 }
  0xd1   : > { %v599_v7 = vmul.f32 5.9604645e-08, %v593_v61 }
  0xd2   : > { %v592_v60 = vadd.f32 1.0, %v586_v50  ;;  %v600_v23 = vmul.f32 5.9604645e-08, %v594_v55 }
  0xd4   : > { %v598_v1 = vmul.f32 5.9604645e-08, %v592_v60 }
 0x145   : > { %v455_v48 = vpop.xlane.xlu0 %454 }
 0x146   : > { %v601_v52 = vmul.f32 %v595_v49, %v455_v48 }
 0x148   : > { %vm607_vm6 = vcmp.ge.f32.partialorder %v995_v3, %v601_v52 }
 0x149   : > { %v458_v56 = vpop.xlane.xlu1 %457  ;;  %v462_v57 = vpop.xlane.xlu0 %461 }
 0x14a   : > { %v602_v58 = vmul.f32 %v596_v53, %v458_v56  ;;  %v603_v59 = vmul.f32 %v597_v54, %v462_v57 }
 0x14c   : > { %vm608_vm7 = vcmp.ge.f32.partialorder %v1003_v14, %v602_v58  ;;  %vm609_vm8 = vcmp.ge.f32.partialorder %v997_v4, %v603_v59 }
 0x14d   : > { %vm613_vm9 = vmpackc.low %vm608_vm7, %vm607_vm6  ;;  %v471_v62 = vpop.xlane.xlu1 %470  ;;  %v465_v63 = vpop.xlane.xlu0 %464 }
 0x14e   : > { %vm614_vm10 = vmpackc.low %vm609_vm8, %vm609_vm8  ;;  %v606_v0 = vmul.f32 %v600_v23, %v471_v62  ;;  %v604_v6 = vmul.f32 %v598_v1, %v465_v63 }
 0x14f   : > { %vm615_vm11 = vmpackc.even %vm614_vm10, %vm613_vm9 }
 0x150   : > { %v619_v5 = vsel %vm615_vm11, 16843009, %v890_v2  ;;  %vm612_vm13 = vcmp.ge.f32.partialorder %v1009_v20, %v606_v0  ;;  %vm610_vm1 = vcmp.ge.f32.partialorder %v1005_v15, %v604_v6 }
 0x151   : > { %v621_v3 = vunpack.c.0.s8 %v619_v5  ;;  %v622_v4 = vunpack.c.1.s8 %v619_v5  ;;  %v623_v14 = vunpack.c.2.s8 %v619_v5  ;;  %v468_v8 = vpop.xlane.xlu0 %467  ;;  %vm617_vm0 = vmpackc.low %vm612_vm13, %vm612_vm13 }
 0x152   : > { %v605_v9 = vmul.f32 %v599_v7, %v468_v8 }
 0x153   : > { %v627_v11 = vpack.c.b16 %v621_v3, %v621_v3  ;;  %v629_v12 = vpack.c.b16 %v622_v4, %v622_v4  ;;  %v631_v13 = vpack.c.b16 %v623_v14, %v623_v14 }
 0x154   : > { %vm611_vm2 = vcmp.ge.f32.partialorder %v1013_v22, %v605_v9 }
 0x155   : > { %v628_v20 = vpack.c.b8 %v627_v11, %v627_v11  ;;  %v630_v17 = vpack.c.b8 %v629_v12, %v629_v12  ;;  %v632_v18 = vpack.c.b8 %v631_v13, %v631_v13  ;;  %vm616_vm3 = vmpackc.low %vm611_vm2, %vm610_vm1 }
 0x156   : > { %vm618_vm4 = vmpackc.even %vm617_vm0, %vm616_vm3 }
 0x157   : > { %640 = vst.msk [vmem:[%s1032_s25] sm:$0x3] %vm639_vm15, %v628_v20  ;;  %641 = vst.msk [vmem:[%s1032_s25 + $0x2] sm:$0x3] %vm639_vm15, %v630_v17  ;;  %v646_v19 = vsel %vm1036_vm14, %v632_v18, %v645_v16  ;;  %v620_v21 = vsel %vm618_vm4, 16843009, %v890_v2 }
 0x158   : > { %647 = vst [vmem:[%s1032_s25 + $0x4] sm:$0x1] %v646_v19  ;;  %v624_v15 = vunpack.c.0.s8 %v620_v21  ;;  %v625_v22 = vunpack.c.1.s8 %v620_v21  ;;  %v626_v24 = vunpack.c.2.s8 %v620_v21 }
 0x15a   : > { %v633_v25 = vpack.c.b16 %v624_v15, %v624_v15  ;;  %v635_v26 = vpack.c.b16 %v625_v22, %v625_v22  ;;  %v637_v27 = vpack.c.b16 %v626_v24, %v626_v24 }
 0x15c   : > { %v634_v28 = vpack.c.b8 %v633_v25, %v633_v25  ;;  %v636_v29 = vpack.c.b8 %v635_v26, %v635_v26  ;;  %v638_v30 = vpack.c.b8 %v637_v27, %v637_v27 }
 0x15e   : > { %648 = vst.msk [vmem:[%s1032_s25 + $0x6] sm:$0x3] %vm639_vm15, %v634_v28  ;;  %649 = vst.msk [vmem:[%s1032_s25 + $0x8] sm:$0x3] %vm639_vm15, %v636_v29  ;;  %v651_v32 = vsel %vm1036_vm14, %v638_v30, %v650_v31 }
 0x15f   : > { %652 = vst [vmem:[%s1032_s25 + $0xa] sm:$0x1] %v651_v32 }
 0x160 PF: > { %s19_s27 = sadd.s32 1, %s888_s27   ;;  %s1076_s25 = smov %s884_s26 }
 0x161   : > { %p16_p5 = scmp.ge.s32.totalorder %s19_s27, 6   ;;  %s1077_s26 = smov %s1079_s0 }
 0x163   :  { %18 = sbr.rel (!%p16_p5) target bundleno = 3 (0x3), region = 85 }

</bundles_post_ra>
